<compile_context>
chip_gen: v5e
topology: v5e:2x2
jax: 0.10.0
libtpu: 0.0.40
codegen_flags: <defaults>
</compile_context>

<pallas_src>
import functools

import jax
import jax.numpy as jnp
from jax.experimental import pallas as pl
from jax.experimental.pallas import tpu as pltpu

DEFAULT_GAMMA = 2.0
_FALLBACK_VMEM_CAPACITY = 64 * 1024 * 1024   # conservative: v7x per-TensorCore VMEM


def _cdiv(a, b):
    return (a + b - 1) // b


def _round_up(a, b):
    return _cdiv(a, b) * b


def _vmem_capacity_bytes():
    """Physical VMEM per TensorCore (128 MiB v5e/v6e, 64 MiB v7x); safe fallback."""
    try:
        info = pltpu.get_tpu_info()
        cap = int(getattr(info, "vmem_capacity_bytes", 0))
        if cap > 0:
            return cap
    except Exception:
        pass
    return _FALLBACK_VMEM_CAPACITY


def _plan_tiles(n, c, itemsize):
    """Pick (tile_n, vmem_limit_bytes) sized by the per-generation VMEM budget."""
    cap = _vmem_capacity_bytes()
    vmem_limit = min(cap // 2, 128 * 1024 * 1024)   # 32 MiB on v7x, 64 MiB on v5e/v6e
    # Per tiled element: double-buffered native-dtype logits (2*itemsize) plus
    # roughly two live tile-sized f32 intermediates inside the kernel (8 bytes).
    usable = (vmem_limit * 3) // 4                  # headroom: targets, acc, spills
    per_elem = 2 * itemsize + 8
    tile_n = (usable // (per_elem * max(1, c))) // 8 * 8
    tile_n = max(8, min(int(tile_n), _round_up(n, 8)))   # never exceed padded batch
    return tile_n, int(vmem_limit)


def _ce_partial_sum_kernel(logits_ref, tgt_ref, out_ref, acc_ref, *,
                           tile_n, n_rows, needs_mask):
    i = pl.program_id(0)

    @pl.when(i == 0)
    def _init():
        acc_ref[...] = jnp.zeros_like(acc_ref)

    x = logits_ref[...]                  # [tile_n, C] native dtype
    tgt = tgt_ref[...]                   # [tile_n, 1] int32
    tn, c = x.shape

    # (1, C) iota; the compare against (tn, 1) targets broadcasts it lazily.
    col_ids = jax.lax.broadcasted_iota(jnp.int32, (1, c), 1)

    # Numerically stable per-row logsumexp. Max and target-pick stay in the
    # native dtype; only the exp/sum/log path runs in f32.
    row_max = jnp.max(x, axis=-1, keepdims=True)
    shifted = (x - row_max).astype(jnp.float32)
    lse = (jnp.log(jnp.sum(jnp.exp(shifted), axis=-1, keepdims=True))
           + row_max.astype(jnp.float32))

    # logits[row, target[row]] via masked select + lane reduce (no one-hot mul).
    # NOTE: out-of-range targets silently pick 0.0 (PyTorch would raise).
    picked = jnp.sum(jnp.where(col_ids == tgt, x, jnp.zeros([], x.dtype)),
                     axis=-1, keepdims=True).astype(jnp.float32)

    contrib = lse - picked                                   # [tile_n, 1]
    if needs_mask:
        # Mask padded rows of the last tile (select -> NaN/Inf garbage is dropped).
        row_ids = i * tile_n + jax.lax.broadcasted_iota(jnp.int32, (tn, 1), 0)
        contrib = jnp.where(row_ids < n_rows, contrib, 0.0)

    # Per-row accumulate in the steady state; collapse to a scalar only at flush.
    acc_ref[...] += contrib

    @pl.when(i == pl.num_programs(0) - 1)
    def _flush():
        out_ref[...] = jnp.sum(acc_ref[...], axis=0, keepdims=True)


def focal_loss_tpu(logits, targets, gamma=DEFAULT_GAMMA):
    """logits: [N, C] float (any dtype), targets: [N] int. Scalar f32 loss.

    Matches FocalLoss(weight=None, gamma, reduction='mean').forward(logits, targets)
    of the provided module (modulator applied to the batch-mean CE).
    """
    n, c = logits.shape
    tgt2d = targets.astype(jnp.int32).reshape(n, 1)

    tile_n, vmem_limit = _plan_tiles(n, c, jnp.dtype(logits.dtype).itemsize)
    total_tiles = _cdiv(n, tile_n)

    kernel = functools.partial(
        _ce_partial_sum_kernel,
        tile_n=tile_n, n_rows=n, needs_mask=(n % tile_n) != 0)

    ce_sum = pl.pallas_call(
        kernel,
        out_shape=jax.ShapeDtypeStruct((1, 1), jnp.float32),
        grid_spec=pltpu.PrefetchScalarGridSpec(
            num_scalar_prefetch=0,
            grid=(total_tiles,),
            in_specs=[
                pl.BlockSpec((tile_n, c), lambda i: (i, 0)),   # logits, native dtype
                pl.BlockSpec((tile_n, 1), lambda i: (i, 0)),   # targets (int32)
            ],
            out_specs=pl.BlockSpec((1, 1), lambda i: (0, 0)),
            scratch_shapes=[pltpu.VMEM((tile_n, 1), jnp.float32)],
        ),
        compiler_params=pltpu.CompilerParams(
            dimension_semantics=("arbitrary",),
            vmem_limit_bytes=vmem_limit,
        ),
    )(logits, tgt2d)

    # reduction='mean' with weight=None -> plain batch mean; then the focal
    # transform on the scalar CE, exactly as the PyTorch module does.
    ce = ce_sum[0, 0] / jnp.float32(n)
    p = jnp.exp(-ce)
    one_minus_p = 1.0 - p
    if isinstance(gamma, (int, float)) and float(gamma) == 2.0:
        modulator = one_minus_p * one_minus_p   # exact for gamma=2; avoids pow->log/exp
    else:
        modulator = one_minus_p ** gamma
    return modulator * ce


def _reference(logits, targets, gamma=DEFAULT_GAMMA):
    # Pure-JAX reference mirroring the PyTorch module.
    logits = logits.astype(jnp.float32)
    lse = jax.scipy.special.logsumexp(logits, axis=-1)
    picked = jnp.take_along_axis(
        logits, targets[:, None].astype(jnp.int32), axis=-1)[:, 0]
    ce = jnp.mean(lse - picked)
    p = jnp.exp(-ce)
    return ((1.0 - p) ** gamma) * ce


if __name__ == "__main__":
    key = jax.random.PRNGKey(0)
    k_logits, k_tgt = jax.random.split(key)

    N, C = 50, 10  # small [batch, num_classes]; N not a multiple of 8 -> exercises masking
    logits = jax.random.normal(k_logits, (N, C), dtype=jnp.float32)
    targets = jax.random.randint(k_tgt, (N,), 0, C, dtype=jnp.int32)

    loss = jax.block_until_ready(focal_loss_tpu(logits, targets))

    ref = _reference(logits, targets)
    assert jnp.allclose(loss, ref, atol=1e-5, rtol=1e-5), (loss, ref)

    print("KERNEL_OK")
</pallas_src>

<mosaic_0001>
module attributes {stable_mosaic.version = 11 : i64} {
  func.func @_ce_partial_sum_kernel(%arg0: i32, %arg1: memref<56x10xf32, #tpu.memory_space<vmem>>, %arg2: memref<56x1xi32, #tpu.memory_space<vmem>>, %arg3: memref<1x1xf32, #tpu.memory_space<vmem>>, %arg4: memref<56x1xf32, #tpu.memory_space<vmem>>) attributes {dimension_semantics = [#tpu.dimension_semantics<arbitrary>], iteration_bounds = array<i64: 1>, scalar_prefetch = 0 : i64, scratch_operands = 1 : i64, tpu.core_type = #tpu.core_type<tc>, window_params = [{transform_indices = @transform_0, window_bounds = array<i64: 56, 10>}, {transform_indices = @transform_1, window_bounds = array<i64: 56, 1>}, {pipeline_mode = #tpu.pipeline_mode<synchronous>, transform_indices = @transform_2, window_bounds = array<i64: 1, 1>}]} {
    %c0_i32 = arith.constant 0 : i32
    %0 = arith.cmpi eq, %arg0, %c0_i32 : i32
    %1 = arith.extui %0 : i1 to i32
    %c0_i32_0 = arith.constant 0 : i32
    %2 = arith.cmpi ne, %1, %c0_i32_0 : i32
    scf.if %2 {
      %cst_14 = arith.constant 0.000000e+00 : f32
      %37 = vector.broadcast %cst_14 : f32 to vector<56x1xf32>
      %c0_15 = arith.constant 0 : index
      %c0_16 = arith.constant 0 : index
      %38 = vector.load %arg4[%c0_15, %c0_16] : memref<56x1xf32, #tpu.memory_space<vmem>>, vector<56x1xf32>
      tpu.vector_store %arg4[%c0_15, %c0_16], %37 {strides = array<i32>} : memref<56x1xf32, #tpu.memory_space<vmem>>, vector<56x1xf32>,
    } else {
    }
    %c0 = arith.constant 0 : index
    %c0_1 = arith.constant 0 : index
    %3 = vector.load %arg1[%c0, %c0_1] : memref<56x10xf32, #tpu.memory_space<vmem>>, vector<56x10xf32>
    %c0_2 = arith.constant 0 : index
    %c0_3 = arith.constant 0 : index
    %4 = vector.load %arg2[%c0_2, %c0_3] : memref<56x1xi32, #tpu.memory_space<vmem>>, vector<56x1xi32>
    %5 = tpu.iota {dimensions = array<i32: 1>} : vector<1x10xi32>
    %cst = arith.constant dense<0xFF800000> : vector<56xf32>
    %6 = vector.multi_reduction <maximumf>, %3, %cst [1] : vector<56x10xf32> to vector<56xf32>
    %7 = vector.shape_cast %6 : vector<56xf32> to vector<56x1xf32>
    %8 = vector.broadcast %7 : vector<56x1xf32> to vector<56x10xf32>
    %9 = arith.subf %3, %8 : vector<56x10xf32>
    %10 = math.exp %9 : vector<56x10xf32>
    %cst_4 = arith.constant dense<0.000000e+00> : vector<56xf32>
    %11 = vector.multi_reduction <add>, %10, %cst_4 [1] : vector<56x10xf32> to vector<56xf32>
    %12 = vector.shape_cast %11 : vector<56xf32> to vector<56x1xf32>
    %13 = math.log %12 : vector<56x1xf32>
    %14 = arith.addf %13, %7 : vector<56x1xf32>
    %15 = vector.broadcast %5 : vector<1x10xi32> to vector<56x10xi32>
    %16 = vector.broadcast %4 : vector<56x1xi32> to vector<56x10xi32>
    %17 = arith.cmpi eq, %15, %16 : vector<56x10xi32>
    %cst_5 = arith.constant 0.000000e+00 : f32
    %18 = vector.broadcast %cst_5 : f32 to vector<56x10xf32>
    %19 = arith.select %17, %3, %18 : vector<56x10xi1>, vector<56x10xf32>
    %cst_6 = arith.constant dense<0.000000e+00> : vector<56xf32>
    %20 = vector.multi_reduction <add>, %19, %cst_6 [1] : vector<56x10xf32> to vector<56xf32>
    %21 = vector.shape_cast %20 : vector<56xf32> to vector<56x1xf32>
    %22 = arith.subf %14, %21 : vector<56x1xf32>
    %c56_i32 = arith.constant 56 : i32
    %23 = arith.muli %arg0, %c56_i32 : i32
    %24 = tpu.iota {dimensions = array<i32: 0>} : vector<56x1xi32>
    %25 = vector.broadcast %23 : i32 to vector<56x1xi32>
    %26 = arith.addi %25, %24 : vector<56x1xi32>
    %c50_i32 = arith.constant 50 : i32
    %27 = vector.broadcast %c50_i32 : i32 to vector<56x1xi32>
    %28 = arith.cmpi slt, %26, %27 : vector<56x1xi32>
    %cst_7 = arith.constant 0.000000e+00 : f32
    %29 = vector.broadcast %cst_7 : f32 to vector<56x1xf32>
    %30 = arith.select %28, %22, %29 : vector<56x1xi1>, vector<56x1xf32>
    %c0_8 = arith.constant 0 : index
    %c0_9 = arith.constant 0 : index
    %31 = vector.load %arg4[%c0_8, %c0_9] : memref<56x1xf32, #tpu.memory_space<vmem>>, vector<56x1xf32>
    %32 = arith.addf %31, %30 : vector<56x1xf32>
    %c0_10 = arith.constant 0 : index
    %c0_11 = arith.constant 0 : index
    %33 = vector.load %arg4[%c0_10, %c0_11] : memref<56x1xf32, #tpu.memory_space<vmem>>, vector<56x1xf32>
    tpu.vector_store %arg4[%c0_10, %c0_11], %32 {strides = array<i32>} : memref<56x1xf32, #tpu.memory_space<vmem>>, vector<56x1xf32>,
    %c0_i32_12 = arith.constant 0 : i32
    %34 = arith.cmpi eq, %arg0, %c0_i32_12 : i32
    %35 = arith.extui %34 : i1 to i32
    %c0_i32_13 = arith.constant 0 : i32
    %36 = arith.cmpi ne, %35, %c0_i32_13 : i32
    scf.if %36 {
      %c0_14 = arith.constant 0 : index
      %c0_15 = arith.constant 0 : index
      %37 = vector.load %arg4[%c0_14, %c0_15] : memref<56x1xf32, #tpu.memory_space<vmem>>, vector<56x1xf32>
      %cst_16 = arith.constant dense<0.000000e+00> : vector<1xf32>
      %38 = vector.multi_reduction <add>, %37, %cst_16 [0] : vector<56x1xf32> to vector<1xf32>
      %39 = vector.shape_cast %38 : vector<1xf32> to vector<1x1xf32>
      %c0_17 = arith.constant 0 : index
      %c0_18 = arith.constant 0 : index
      %40 = vector.load %arg3[%c0_17, %c0_18] : memref<1x1xf32, #tpu.memory_space<vmem>>, vector<1x1xf32>
      tpu.vector_store %arg3[%c0_17, %c0_18], %39 {strides = array<i32>} : memref<1x1xf32, #tpu.memory_space<vmem>>, vector<1x1xf32>,
    } else {
    }
    return
  }
  func.func @transform_0(%arg0: i32) -> (i32, i32) {
    %c0_i32 = arith.constant 0 : i32
    %c0_i32_0 = arith.constant 0 : i32
    return %arg0, %c0_i32 : i32, i32
  }
  func.func @transform_1(%arg0: i32) -> (i32, i32) {
    %c0_i32 = arith.constant 0 : i32
    %c0_i32_0 = arith.constant 0 : i32
    return %arg0, %c0_i32 : i32, i32
  }
  func.func @transform_2(%arg0: i32) -> (i32, i32) {
    %c0_i32 = arith.constant 0 : i32
    %c0_i32_0 = arith.constant 0 : i32
    %c0_i32_1 = arith.constant 0 : i32
    return %c0_i32, %c0_i32_0 : i32, i32
  }
}

</mosaic_0001>

<bundles_post_ra>
// kernel: tpu_custom_call.1
= control target key start
LH: loop header
LB: loop body
LE: loop exit
PB: predicated region body
PF: predicated region fallthrough
CT: control target
= control target key end

     0   :  { %vm40_vm0 = vcmask 80896   ;;  %v348_v6 = vmov 0   ;;  %s518_s0 = inlined_call_operand.vmem [shape: f32[50,10], index: 0, kind: input, shape index: {}]   ;;  %s519_s1 = inlined_call_operand.vmem [shape: s32[50,1], index: 1, kind: input, shape index: {}]   ;;  %s520_s2 = inlined_call_operand.hbm [shape: f32[1,1], index: 2, kind: output, shape index: {}]  }
   0x1   :  { %v369_v0 = vld [vmem:[%s518_s0 + $0x10] sm:$0xff]  ;;  %v374_v1 = vld [vmem:[%s518_s0] sm:$0xff]  ;;  %291 = vset.pattern.permute.xlu1 %v348_v6  ;;  %293 = vset.pattern.permute.xlu0 %v348_v6 }
   0x2   :  { %v379_v2 = vld [vmem:[%s518_s0 + $0x20] sm:$0xff]  ;;  %v47_v3 = vsel %vm40_vm0, %v369_v0, -inf  ;;  %v41_v4 = vsel %vm40_vm0, %v374_v1, -inf }
   0x3   :  { %v53_v5 = vsel %vm40_vm0, %v379_v2, -inf  ;;  %48 = vmax.xlane.f32.xlu1 %v47_v3  ;;  %42 = vmax.xlane.f32.xlu0 %v41_v4 }
   0x4   :  { %54 = vmax.xlane.f32.xlu2 %v53_v5 }
   0x5   :  { %7 = vsyncpa [#allocation4], 0  ;;  %v390_v7 = vld [vmem:[%s518_s0 + $0x18] sm:$0xff]  ;;  %v395_v8 = vld [vmem:[%s518_s0 + $0x8] sm:$0xff]  ;;  %292 = vset.pattern.permute.xlu2 %v348_v6  ;;  %v38_v46 = vlaneseq  ;;  %vm16_vm8 = vcmask 7168   ;;  %s279_s11 = sshll.u32 %s520_s2, 4  ;;  %s280_s11 = int_to_ptr.hbm [resolvable:$true] %s279_s11 }
   0x6   :  { %v400_v9 = vld [vmem:[%s518_s0 + $0x28] sm:$0xff]  ;;  %v50_v10 = vsel %vm40_vm0, %v390_v7, -inf  ;;  %v44_v11 = vsel %vm40_vm0, %v395_v8, -inf  ;;  %v411_v13 = vld [vmem:[%s518_s0 + $0x30] sm:$0xff]  ;;  %v31_v15 = vld [vmem:[%s519_s1] sm:$0xff]  ;;  %vm270_vm10 = vcmask 0  }
   0x7   :  { %v56_v12 = vsel %vm40_vm0, %v400_v9, -inf  ;;  %v59_v14 = vsel %vm40_vm0, %v411_v13, -inf  ;;  %v32_v16 = vld [vmem:[%s519_s1 + $0x8] sm:$0xff]  ;;  %v33_v17 = vld [vmem:[%s519_s1 + $0x10] sm:$0xff]  ;;  %v35_v18 = vld [vmem:[%s519_s1 + $0x20] sm:$0xff]  ;;  %v39_v48 = vand.u32 127, %v38_v46 }
   0x8   :  { %v34_v19 = vld [vmem:[%s519_s1 + $0x18] sm:$0xff]  ;;  %v37_v20 = vld [vmem:[%s519_s1 + $0x30] sm:$0xff]  ;;  %v36_v21 = vld [vmem:[%s519_s1 + $0x28] sm:$0xff]  ;;  %s350_s1 = smov [#allocation3]  }
   0x9   :  { %s277_s8 = sshll.u32 %s350_s1, 4  ;;  %s278_s8 = int_to_ptr.vmem [resolvable:$true] %s277_s8 }
   0xb   :  { %51 = vmax.xlane.f32.xlu1 %v50_v10  ;;  %45 = vmax.xlane.f32.xlu0 %v44_v11 }
   0xc   :  { %57 = vmax.xlane.f32.xlu2 %v56_v12 }
  0x13   :  { %60 = vmax.xlane.f32.xlu0 %v59_v14 }
  0x24   :  { %126 = vperm.xlu1 %291, %v31_v15   ;;  %129 = vperm.xlu2 %292, %v32_v16  }
  0x27   :  { %132 = vperm.xlu0 %293, %v33_v17  }
  0x2c   :  { %138 = vperm.xlu1 %291, %v35_v18   ;;  %135 = vperm.xlu2 %292, %v34_v19   ;;  %v349_v18 = vmov 0.0  }
  0x2d   :  { %17 = vst.msk [vmem:[#allocation2] sm:$0xff] %vm16_vm8, %v349_v18 }
  0x2e   :  { %18 = vst.msk [vmem:[#allocation2 + $0x8] sm:$0xff] %vm16_vm8, %v349_v18 }
  0x2f   :  { %19 = vst.msk [vmem:[#allocation2 + $0x10] sm:$0xff] %vm16_vm8, %v349_v18 }
  0x30   :  { %20 = vst.msk [vmem:[#allocation2 + $0x18] sm:$0xff] %vm16_vm8, %v349_v18 }
  0x31   :  { %21 = vst.msk [vmem:[#allocation2 + $0x20] sm:$0xff] %vm16_vm8, %v349_v18 }
  0x32   :  { %22 = vst.msk [vmem:[#allocation2 + $0x28] sm:$0xff] %vm16_vm8, %v349_v18 }
  0x33   :  { %23 = vst.msk [vmem:[#allocation2 + $0x30] sm:$0xff] %vm16_vm8, %v349_v18 }
  0x34   :  { %144 = vperm.xlu1 %291, %v37_v20   ;;  %141 = vperm.xlu2 %292, %v36_v21  }
  0x76   :  { %v436_v22 = vpop.xlane.xlu1 %48  ;;  %v438_v23 = vpop.xlane.xlu0 %42 }
  0x77   :  { %v64_v24 = vsub.f32 %v369_v0, %v436_v22  ;;  %v62_v25 = vsub.f32 %v374_v1, %v438_v23  ;;  %v444_v26 = vpop.xlane.xlu2 %54 }
  0x78   :  { %v66_v57 = vsub.f32 %v379_v2, %v444_v26 }
  0x79   :  { %v73_v27 = vmul.f32 1.442695, %v64_v24  ;;  %v69_v28 = vmul.f32 1.442695, %v62_v25 }
  0x7a   :  { %v77_v3 = vmul.f32 1.442695, %v66_v57  ;;  %v220_v57 = vld [vmem:[#allocation2 + $0x8] sm:$0xff] }
  0x7b   :  { %294 = vpow2.f32 %v73_v27 }
  0x7c   :  { %296 = vpow2.f32 %v69_v28 }
  0x7e   :  { %v446_v29 = vpop.xlane.xlu1 %51  ;;  %v448_v30 = vpop.xlane.xlu0 %45 }
  0x7f   :  { %v65_v31 = vsub.f32 %v390_v7, %v446_v29  ;;  %v452_v32 = vpop.xlane.xlu2 %57  ;;  %v63_v50 = vsub.f32 %v395_v8, %v448_v30 }
  0x80   :  { %v67_v33 = vsub.f32 %v400_v9, %v452_v32 }
  0x81   :  { %v295_v34 = vpop.eup %294  ;;  %v75_v35 = vmul.f32 1.442695, %v65_v31  ;;  %v71_v54 = vmul.f32 1.442695, %v63_v50 }
  0x82   :  { %v297_v36 = vpop.eup %296  ;;  %v89_v37 = vsel %vm40_vm0, %v295_v34, 0.0  ;;  %v79_v39 = vmul.f32 1.442695, %v67_v33  ;;  %v219_v34 = vld [vmem:[#allocation2] sm:$0xff] }
  0x83   :  { %298 = vpow2.f32 %v75_v35  ;;  %90 = vadd.xlane.f32.xlu0 %v89_v37  ;;  %v83_v38 = vsel %vm40_vm0, %v297_v36, 0.0 }
  0x84   :  { %84 = vadd.xlane.f32.xlu2 %v83_v38  ;;  %300 = vpow2.f32 %v79_v39 }
  0x86   :  { %v458_v40 = vpop.xlane.xlu0 %60 }
  0x87   :  { %v68_v41 = vsub.f32 %v411_v13, %v458_v40  ;;  %v130_v42 = vpop.permute.xlu2 %129 }
  0x88   :  { %vm147_vm1 = vcmp.eq.s32.totalorder %v39_v48, %v130_v42 }
  0x89   :  { %v299_v43 = vpop.eup %298  ;;  %v81_v44 = vmul.f32 1.442695, %v68_v41  ;;  %v154_v56 = vsel %vm147_vm1, %v395_v8, 0.0  ;;  %v221_v41 = vld [vmem:[#allocation2 + $0x10] sm:$0xff] }
  0x8a   :  { %v92_v45 = vsel %vm40_vm0, %v299_v43, 0.0  ;;  %v301_v47 = vpop.eup %300  ;;  %v163_v61 = vsel %vm40_vm0, %v154_v56, 0.0 }
  0x8b   :  { %302 = vpow2.f32 %v81_v44  ;;  %v98_v52 = vsel %vm40_vm0, %v301_v47, 0.0 }
  0x8c   :  { %93 = vadd.xlane.f32.xlu2 %v92_v45  ;;  %304 = vpow2.f32 %v71_v54 }
  0x8d   :  { %306 = vpow2.f32 %v77_v3  ;;  %v222_v3 = vld [vmem:[#allocation2 + $0x18] sm:$0xff] }
  0x8f   :  { %v136_v49 = vpop.permute.xlu2 %135 }
  0x90   :  { %vm149_vm6 = vcmp.eq.s32.totalorder %v39_v48, %v136_v49 }
  0x91   :  { %v303_v51 = vpop.eup %302  ;;  %v156_v15 = vsel %vm149_vm6, %v390_v7, 0.0 }
  0x92   :  { %v101_v53 = vsel %vm40_vm0, %v303_v51, 0.0  ;;  %v305_v5 = vpop.eup %304  ;;  %v169_v16 = vsel %vm40_vm0, %v156_v15, 0.0 }
  0x93   :  { %102 = vadd.xlane.f32.xlu0 %v101_v53  ;;  %v86_v10 = vsel %vm40_vm0, %v305_v5, 0.0  ;;  %v307_v12 = vpop.eup %306 }
  0x94   :  { %99 = vadd.xlane.f32.xlu2 %v98_v52  ;;  %v95_v14 = vsel %vm40_vm0, %v307_v12, 0.0 }
  0x96   :  { %v127_v55 = vpop.permute.xlu1 %126 }
  0x97   :  { %vm146_vm2 = vcmp.eq.s32.totalorder %v39_v48, %v127_v55  ;;  %v142_v62 = vpop.permute.xlu2 %141 }
  0x98   :  { %v153_v58 = vsel %vm146_vm2, %v374_v1, 0.0  ;;  %vm151_vm4 = vcmp.eq.s32.totalorder %v39_v48, %v142_v62 }
  0x99   :  { %v133_v59 = vpop.permute.xlu0 %132  ;;  %v160_v60 = vsel %vm40_vm0, %v153_v58, 0.0  ;;  %v158_v1 = vsel %vm151_vm4, %v400_v9, 0.0 }
  0x9a   :  { %vm148_vm3 = vcmp.eq.s32.totalorder %v39_v48, %v133_v59  ;;  %161 = vadd.xlane.f32.xlu1 %v160_v60 }
  0x9b   :  { %v155_v63 = vsel %vm148_vm3, %v369_v0, 0.0  ;;  %v175_v0 = vsel %vm40_vm0, %v158_v1, 0.0 }
  0x9c   :  { %164 = vadd.xlane.f32.xlu2 %v163_v61  ;;  %v166_v4 = vsel %vm40_vm0, %v155_v63, 0.0 }
  0x9d   :  { %167 = vadd.xlane.f32.xlu0 %v166_v4  ;;  %v190_v4 = vshrl.u32 %v38_v46, 7 }
  0x9e   :  { %v139_v6 = vpop.permute.xlu1 %138 }
  0x9f   :  { %vm150_vm5 = vcmp.eq.s32.totalorder %v39_v48, %v139_v6 }
  0xa0   :  { %v157_v8 = vsel %vm150_vm5, %v379_v2, 0.0 }
  0xa1   :  { %v172_v11 = vsel %vm40_vm0, %v157_v8, 0.0  ;;  %v223_v8 = vld [vmem:[#allocation2 + $0x20] sm:$0xff] }
  0xa2   :  { %87 = vadd.xlane.f32.xlu1 %v86_v10 }
  0xa4   :  { %173 = vadd.xlane.f32.xlu2 %v172_v11 }
  0xa5   :  { %176 = vadd.xlane.f32.xlu0 %v175_v0  ;;  %v196_v0 = vadd.s32 48, %v190_v4 }
  0xa6   :  { %v145_v9 = vpop.permute.xlu1 %144 }
  0xa7   :  { %vm152_vm7 = vcmp.eq.s32.totalorder %v39_v48, %v145_v9  ;;  %v224_v48 = vld [vmem:[#allocation2 + $0x28] sm:$0xff]  ;;  %vm211_vm9 = vcmp.lt.s32.totalorder %v196_v0, 50 }
  0xa8   :  { %v159_v2 = vsel %vm152_vm7, %v411_v13, 0.0 }
  0xa9   :  { %v178_v17 = vsel %vm40_vm0, %v159_v2, 0.0 }
  0xaa   :  { %96 = vadd.xlane.f32.xlu1 %v95_v14 }
  0xb2   :  { %170 = vadd.xlane.f32.xlu1 %v169_v16 }
  0xba   :  { %179 = vadd.xlane.f32.xlu1 %v178_v17  ;;  %v225_v17 = vld [vmem:[#allocation2 + $0x30] sm:$0xff] }
  0xf6   :  { %v91_v13 = vpop.xlane.xlu0 %90 }
  0xf7   :  { %v85_v7 = vpop.xlane.xlu2 %84 }
  0xf8   :  { %308 = vlog2.f32 %v85_v7 }
  0xf9   :  { %310 = vlog2.f32 %v91_v13 }
  0xfe   :  { %v309_v20 = vpop.eup %308 }
  0xff   :  { %v94_v19 = vpop.xlane.xlu2 %93  ;;  %v311_v24 = vpop.eup %310  ;;  %v105_v25 = vmul.f32 0.6931472, %v309_v20 }
 0x100   :  { %v109_v28 = vmul.f32 0.6931472, %v311_v24 }
 0x101   :  { %v118_v31 = vadd.f32 %v105_v25, %v438_v23 }
 0x102   :  { %v120_v36 = vadd.f32 %v109_v28, %v436_v22 }
 0x106   :  { %v103_v27 = vpop.xlane.xlu0 %102 }
 0x107   :  { %v100_v21 = vpop.xlane.xlu2 %99 }
 0x108   :  { %312 = vlog2.f32 %v100_v21 }
 0x10d   :  { %v162_v33 = vpop.xlane.xlu1 %161 }
 0x10e   :  { %v181_v35 = vsub.f32 %v118_v31, %v162_v33  ;;  %v313_v37 = vpop.eup %312 }
 0x10f   :  { %v115_v43 = vmul.f32 0.6931472, %v313_v37  ;;  %v165_v54 = vpop.xlane.xlu2 %164 }
 0x110   :  { %v226_v38 = vadd.f32 %v219_v34, %v181_v35  ;;  %v168_v39 = vpop.xlane.xlu0 %167 }
 0x111   :  { %v183_v42 = vsub.f32 %v120_v36, %v168_v39  ;;  %v123_v23 = vadd.f32 %v115_v43, %v452_v32 }
 0x112   :  { %234 = vst.msk [vmem:[#allocation2] sm:$0xff] %vm16_vm8, %v226_v38 }
 0x113   :  { %v228_v44 = vadd.f32 %v221_v41, %v183_v42 }
 0x115   :  { %236 = vst.msk [vmem:[#allocation2 + $0x10] sm:$0xff] %vm16_vm8, %v228_v44  ;;  %v88_v45 = vpop.xlane.xlu1 %87 }
 0x116   :  { %314 = vlog2.f32 %v88_v45 }
 0x117   :  { %316 = vlog2.f32 %v94_v19 }
 0x118   :  { %v177_v47 = vpop.xlane.xlu0 %176 }
 0x119   :  { %v186_v49 = vsub.f32 %v123_v23, %v177_v47 }
 0x11b   :  { %v231_v22 = vadd.f32 %v224_v48, %v186_v49 }
 0x11c   :  { %v315_v50 = vpop.eup %314  ;;  %v246_v9 = vld [vmem:[#allocation2 + $0x10] sm:$0xff] }
 0x11d   :  { %v317_v51 = vpop.eup %316  ;;  %v107_v52 = vmul.f32 0.6931472, %v315_v50  ;;  %239 = vst.msk [vmem:[#allocation2 + $0x28] sm:$0xff] %vm16_vm8, %v231_v22  ;;  %v97_v53 = vpop.xlane.xlu1 %96  ;;  %v254_v7 = vsel %vm16_vm8, %v246_v9, 0.0 }
 0x11e   :  { %318 = vlog2.f32 %v97_v53  ;;  %v111_v56 = vmul.f32 0.6931472, %v317_v51 }
 0x11f   :  { %320 = vlog2.f32 %v103_v27  ;;  %v119_v55 = vadd.f32 %v107_v52, %v448_v30  ;;  %v174_v30 = vpop.xlane.xlu2 %173 }
 0x120   :  { %v121_v60 = vadd.f32 %v111_v56, %v446_v29  ;;  %v244_v29 = vld [vmem:[#allocation2] sm:$0xff] }
 0x121   :  { %v182_v58 = vsub.f32 %v119_v55, %v165_v54 }
 0x123   :  { %v227_v59 = vadd.f32 %v220_v57, %v182_v58 }
 0x124   :  { %v319_v32 = vpop.eup %318  ;;  %v249_v28 = vld [vmem:[#allocation2 + $0x28] sm:$0xff] }
 0x125   :  { %v321_v61 = vpop.eup %320  ;;  %235 = vst.msk [vmem:[#allocation2 + $0x8] sm:$0xff] %vm16_vm8, %v227_v59  ;;  %v113_v62 = vmul.f32 0.6931472, %v319_v32  ;;  %v171_v63 = vpop.xlane.xlu1 %170  ;;  %v260_v33 = vsel %vm16_vm8, %v249_v28, 0.0 }
 0x126   :  { %v184_v5 = vsub.f32 %v121_v60, %v171_v63  ;;  %v117_v1 = vmul.f32 0.6931472, %v321_v61 }
 0x127   :  { %v122_v6 = vadd.f32 %v113_v62, %v444_v26  ;;  %v251_v26 = vsel %vm16_vm8, %v244_v29, 0.0 }
 0x128   :  { %v229_v10 = vadd.f32 %v222_v3, %v184_v5  ;;  %v124_v14 = vadd.f32 %v117_v1, %v458_v40 }
 0x129   :  { %v185_v11 = vsub.f32 %v122_v6, %v174_v30 }
 0x12a   :  { %237 = vst.msk [vmem:[#allocation2 + $0x18] sm:$0xff] %vm16_vm8, %v229_v10 }
 0x12b   :  { %v230_v12 = vadd.f32 %v223_v8, %v185_v11 }
 0x12c   :  { %v245_v15 = vld [vmem:[#allocation2 + $0x8] sm:$0xff] }
 0x12d   :  { %238 = vst.msk [vmem:[#allocation2 + $0x20] sm:$0xff] %vm16_vm8, %v230_v12  ;;  %v180_v46 = vpop.xlane.xlu1 %179  ;;  %v252_v16 = vsel %vm16_vm8, %v245_v15, 0.0 }
 0x12e   :  { %v187_v2 = vsub.f32 %v124_v14, %v180_v46  ;;  %v253_v18 = vadd.f32 %v252_v16, %v251_v26 }
 0x130   :  { %v218_v13 = vsel %vm211_vm9, %v187_v2, 0.0  ;;  %v255_v19 = vadd.f32 %v254_v7, %v253_v18 }
 0x131   :  { %v232_v20 = vadd.f32 %v225_v17, %v218_v13  ;;  %v247_v21 = vld [vmem:[#allocation2 + $0x18] sm:$0xff] }
 0x132   :  { %v256_v40 = vsel %vm16_vm8, %v247_v21, 0.0 }
 0x133   :  { %240 = vst.msk [vmem:[#allocation2 + $0x30] sm:$0xff] %vm16_vm8, %v232_v20  ;;  %v257_v24 = vadd.f32 %v256_v40, %v255_v19 }
 0x134   :  { %v248_v25 = vld [vmem:[#allocation2 + $0x20] sm:$0xff] }
 0x135   :  { %v258_v27 = vsel %vm16_vm8, %v248_v25, 0.0 }
 0x136   :  { %v259_v31 = vadd.f32 %v258_v27, %v257_v24 }
 0x138   :  { %v261_v35 = vadd.f32 %v260_v33, %v259_v31 }
 0x13a   :  { %v250_v34 = vld [vmem:[#allocation2 + $0x30] sm:$0xff] }
 0x13b   :  { %v262_v36 = vsel %vm16_vm8, %v250_v34, 0.0 }
 0x13c   :  { %v263_v37 = vadd.f32 %v262_v36, %v261_v35 }
 0x13e   :  { %v264_v38 = vrot.slane %v263_v37, 4 }
 0x140   :  { %v265_v39 = vadd.f32 %v264_v38, %v263_v37 }
 0x142   :  { %v266_v41 = vrot.slane %v265_v39, 2 }
 0x144   :  { %v267_v42 = vadd.f32 %v266_v41, %v265_v39 }
 0x146   :  { %v268_v43 = vrot.slane %v267_v42, 1 }
 0x148   :  { %v269_v44 = vadd.f32 %v268_v43, %v267_v42 }
 0x14a   :  { %271 = vst.msk [vmem:[#allocation3] sm:$0x1] %vm270_vm10, %v269_v44 }
 0x14b   :  { %282 = dma.vmem_to_hbm [thread:$0]  %s278_s8, 16, %s280_s11, [#allocation4]  }
 0x14c   :  { %346 = dma.done.wait [#allocation4], 16  }
 0x14d   :  { %347 = vsyncadd [#allocation4], 4294967280 }
 0x14e   :  { %287 = vsyncpa [#allocation4], 1 }

</bundles_post_ra>
